<compile_context>
chip_gen: v7x
topology: tpu7x:2x2x1
jax: 0.10.0
libtpu: 0.0.40
codegen_flags: <defaults>
</compile_context>

<pallas_src>
import jax
import jax.numpy as jnp
from jax.experimental import pallas as pl
from jax.experimental.pallas import tpu as pltpu


# ------------------------------- math ------------------------------------- #

def _gelu_tanh(g):
    """tanh-approximate GELU in g's dtype (tanh goes to the EUP slot)."""
    dt = g.dtype
    c0 = jnp.asarray(0.7978845608028654, dt)   # sqrt(2/pi)
    c1 = jnp.asarray(0.044715, dt)
    half = jnp.asarray(0.5, dt)
    one = jnp.asarray(1.0, dt)
    return half * g * (one + jnp.tanh(c0 * (g + c1 * (g * g * g))))


def _make_split_kernel(compute_dtype):
    # Two lane-aligned (TM, TC) windows delivered by separate DMAs.
    def kernel(a_ref, g_ref, o_ref):
        g = g_ref[...].astype(compute_dtype)
        ge = _gelu_tanh(g)
        a = a_ref[...]
        if a.dtype != compute_dtype:
            a = a.astype(compute_dtype)
        o_ref[...] = (a * ge).astype(o_ref.dtype)
    return kernel


def _make_fused_kernel(h, compute_dtype):
    # One fused (TM, 2H) block; slice in-kernel (tile-aligned view when
    # h % 128 == 0, relayout fallback otherwise).
    def kernel(x_ref, o_ref):
        blk = x_ref[...]
        a = blk[:, :h]
        g = blk[:, h:].astype(compute_dtype)
        ge = _gelu_tanh(g)
        if a.dtype != compute_dtype:
            a = a.astype(compute_dtype)
        o_ref[...] = (a * ge).astype(o_ref.dtype)
    return kernel


# ----------------------------- tiling logic -------------------------------- #

def _round_up(x: int, m: int) -> int:
    return ((x + m - 1) // m) * m


def _largest_aligned_divisor(h: int, max_tc: int) -> int:
    """Largest multiple of 128 that divides h and is <= max_tc (>= 128)."""
    best = 128
    d = 128
    lim = min(h, max(max_tc, 128))
    while d <= lim:
        if h % d == 0:
            best = d
        d += 128
    return best


def _vmem_capacity() -> int:
    try:
        return int(pltpu.get_tpu_info().vmem_capacity_bytes)
    except Exception:
        return 64 * 1024 * 1024   # conservative fallback: v7x has 64 MiB / TC


def _bf16_native() -> bool:
    """True on chips with bf16-native VPU/EUP (v6e / v7x)."""
    try:
        kind = jax.devices()[0].device_kind.lower()
    except Exception:
        return False
    return ("v6" in kind) or ("v7" in kind) or ("7x" in kind)


def _pick_compute_dtype(x_dtype):
    dt = jnp.dtype(x_dtype)
    if dt == jnp.dtype(jnp.bfloat16) and _bf16_native():
        return jnp.bfloat16          # v6e/v7x: bf16 VPU+EUP, half the vregs
    return jnp.float32               # v5e (no bf16 VALU) and f32/f16 inputs


def _pick_tiling(rows: int, h: int, itemsize: int, lane_split: bool):
    """Return (tm, tc, vmem_limit). tc == h unless column tiling kicks in."""
    # sublane packing: f32 -> 8, bf16/f16 -> 16, int8/fp8 -> 32
    pack = 8 * max(1, 4 // max(1, itemsize))

    vmem_cap = _vmem_capacity()
    # Double-buffered buffers: 2*(in_a + in_g + out) = 6*TM*TC elems per step.
    budget = min(int(vmem_cap * 0.6), 48 * 1024 * 1024)

    TM_CAP = 512   # streaming kernels hit ~85% of HBM roofline at 512 rows

    tc = h
    if lane_split and budget // (6 * h * itemsize) < 128:
        # H so wide that <128 rows fit the budget: tile the column axis too.
        # tc is a 128-multiple divisor of H so both halves stay addressable by
        # block index (gate block offset = H // tc).
        max_tc = max(128, budget // (6 * max(TM_CAP, pack) * itemsize))
        tc = _largest_aligned_divisor(h, max_tc)

    tm = budget // (6 * tc * itemsize)
    tm = max(pack, (tm // pack) * pack)
    tm = min(tm, TM_CAP, _round_up(rows, pack))
    # v7x megacore: keep >= ~4 row blocks when rows allow so the 'parallel'
    # axis can be sharded across 2 TensorCores (harmless on 1-TC v5e/v6e).
    tm = min(tm, max(pack, _round_up(pl.cdiv(rows, 4), pack)))
    tm = max(tm, pack)

    needed = 6 * tm * tc * itemsize
    vmem_limit = min(vmem_cap, max(int(needed * 1.5) + (2 << 20), 32 << 20))
    return tm, tc, int(vmem_limit)


# ------------------------------- wrapper ----------------------------------- #

def geglu(x: jax.Array) -> jax.Array:
    """GEGLU over the last axis of x (last dim must be even)."""
    *lead, two_h = x.shape
    assert two_h % 2 == 0, "last dim must be even for GEGLU"
    h = two_h // 2

    rows = 1
    for d in lead:
        rows *= d
    if rows == 0:
        return jnp.zeros((*lead, h), x.dtype)

    x2d = x.reshape(rows, two_h)
    itemsize = jnp.dtype(x.dtype).itemsize
    compute_dtype = _pick_compute_dtype(x.dtype)

    # Small lane-aligned H (<= 512) prefers the fused contiguous-row block;
    # large aligned H uses two lane-aligned windows (better DMA bursts).
    lane_split = (h % 128 == 0) and (h > 512)

    tm, tc, vmem_limit = _pick_tiling(rows, h, itemsize, lane_split)
    n_row = pl.cdiv(rows, tm)

    cost = pl.CostEstimate(
        flops=8 * rows * h,
        transcendentals=rows * h,
        bytes_accessed=3 * rows * h * itemsize,
    )

    if lane_split:
        n_col = h // tc
        if n_col > 1:
            gate_off = n_col   # gate half starts at block-index H//tc
            grid = (n_row, n_col)
            in_specs = [
                pl.BlockSpec((tm, tc), lambda i, j: (i, j)),             # value
                pl.BlockSpec((tm, tc), lambda i, j: (i, j + gate_off)),  # gate
            ]
            out_specs = pl.BlockSpec((tm, tc), lambda i, j: (i, j))
            sems = ("parallel", "parallel")
        else:
            grid = (n_row,)
            in_specs = [
                pl.BlockSpec((tm, h), lambda i: (i, 0)),   # value half
                pl.BlockSpec((tm, h), lambda i: (i, 1)),   # gate half
            ]
            out_specs = pl.BlockSpec((tm, h), lambda i: (i, 0))
            sems = ("parallel",)

        out2d = pl.pallas_call(
            _make_split_kernel(compute_dtype),
            out_shape=jax.ShapeDtypeStruct((rows, h), x.dtype),
            grid_spec=pltpu.PrefetchScalarGridSpec(
                num_scalar_prefetch=0,
                grid=grid,
                in_specs=in_specs,
                out_specs=out_specs,
            ),
            compiler_params=pltpu.CompilerParams(
                dimension_semantics=sems, vmem_limit_bytes=vmem_limit),
            cost_estimate=cost,
        )(x2d, x2d)
    else:
        # Fused single-input block (2H == full last dim, always legal).
        out2d = pl.pallas_call(
            _make_fused_kernel(h, compute_dtype),
            out_shape=jax.ShapeDtypeStruct((rows, h), x.dtype),
            grid_spec=pltpu.PrefetchScalarGridSpec(
                num_scalar_prefetch=0,
                grid=(n_row,),
                in_specs=[pl.BlockSpec((tm, two_h), lambda i: (i, 0))],
                out_specs=pl.BlockSpec((tm, h), lambda i: (i, 0)),
            ),
            compiler_params=pltpu.CompilerParams(
                dimension_semantics=("parallel",), vmem_limit_bytes=vmem_limit),
            cost_estimate=cost,
        )(x2d)

    return out2d.reshape(*lead, h)


# ------------------------------ references --------------------------------- #

def _geglu_ref_tanh(x: jax.Array) -> jax.Array:
    h = x.shape[-1] // 2
    a, g = x[..., :h], x[..., h:]
    out = a.astype(jnp.float32) * _gelu_tanh(g.astype(jnp.float32))
    return out.astype(x.dtype)


def _geglu_ref_exact(x: jax.Array) -> jax.Array:
    h = x.shape[-1] // 2
    a, g = x[..., :h], x[..., h:]
    out = a.astype(jnp.float32) * jax.nn.gelu(g.astype(jnp.float32),
                                              approximate=False)
    return out.astype(x.dtype)


if __name__ == "__main__":
    key = jax.random.PRNGKey(0)
    k1, k2, k3, k4 = jax.random.split(key, 4)

    # 1) Small module-like shape (batch=2, seq=8, hidden=64 -> 2x32).
    #    Fused path, H not lane-aligned.
    x = jax.random.normal(k1, (2, 8, 64), dtype=jnp.float32)
    out = jax.block_until_ready(geglu(x))
    assert out.shape == (2, 8, 32), out.shape
    assert jnp.allclose(out, _geglu_ref_tanh(x), atol=1e-5, rtol=1e-5)
    assert jnp.allclose(out, _geglu_ref_exact(x), atol=3e-3, rtol=1e-2)

    # 2) Lane-aligned small H (=128): fused path with tile-aligned in-kernel split.
    x2 = jax.random.normal(k2, (4, 16, 256), dtype=jnp.float32)
    out2 = jax.block_until_ready(geglu(x2))
    assert out2.shape == (4, 16, 128), out2.shape
    assert jnp.allclose(out2, _geglu_ref_tanh(x2), atol=1e-5, rtol=1e-5)
    assert jnp.allclose(out2, _geglu_ref_exact(x2), atol=3e-3, rtol=1e-2)

    # 3) Lane-aligned large H (=1024): split (two-BlockSpec) fast path.
    x3 = jax.random.normal(k3, (2, 64, 2048), dtype=jnp.float32)
    out3 = jax.block_until_ready(geglu(x3))
    assert out3.shape == (2, 64, 1024), out3.shape
    assert jnp.allclose(out3, _geglu_ref_tanh(x3), atol=1e-5, rtol=1e-5)

    # 4) Very wide H (=16640): exercises the column-tiled 2-D grid.
    x4 = jax.random.normal(k4, (2, 16, 33280), dtype=jnp.float32)
    out4 = jax.block_until_ready(geglu(x4))
    assert out4.shape == (2, 16, 16640), out4.shape
    assert jnp.allclose(out4, _geglu_ref_tanh(x4), atol=1e-5, rtol=1e-5)

    # 5) bf16 sanity (bf16 compute on v6e/v7x, f32 compute + single cast on v5e).
    x5 = x3.astype(jnp.bfloat16)
    out5 = jax.block_until_ready(geglu(x5))
    assert out5.dtype == jnp.bfloat16
    ref5 = _geglu_ref_exact(x5).astype(jnp.float32)
    assert jnp.allclose(out5.astype(jnp.float32), ref5, atol=2e-2, rtol=2e-2)

    print("KERNEL_OK")
</pallas_src>

<mosaic_0001>
module attributes {stable_mosaic.version = 11 : i64} {
  func.func @kernel(%arg0: i32, %arg1: memref<8x64xf32, #tpu.memory_space<vmem>>, %arg2: memref<8x32xf32, #tpu.memory_space<vmem>>) attributes {dimension_semantics = [#tpu.dimension_semantics<parallel>], iteration_bounds = array<i64: 2>, scalar_prefetch = 0 : i64, scratch_operands = 0 : i64, tpu.core_type = #tpu.core_type<tc>, window_params = [{transform_indices = @transform_0, window_bounds = array<i64: 8, 64>}, {transform_indices = @transform_1, window_bounds = array<i64: 8, 32>}]} {
    %c0 = arith.constant 0 : index
    %c0_0 = arith.constant 0 : index
    %0 = vector.load %arg1[%c0, %c0_0] : memref<8x64xf32, #tpu.memory_space<vmem>>, vector<8x64xf32>
    %1 = vector.extract_strided_slice %0 {offsets = [0, 0], sizes = [8, 32], strides = [1, 1]} : vector<8x64xf32> to vector<8x32xf32>
    %2 = vector.extract_strided_slice %0 {offsets = [0, 32], sizes = [8, 32], strides = [1, 1]} : vector<8x64xf32> to vector<8x32xf32>
    %cst = arith.constant 5.000000e-01 : f32
    %3 = vector.broadcast %cst : f32 to vector<8x32xf32>
    %4 = arith.mulf %3, %2 : vector<8x32xf32>
    %5 = arith.mulf %2, %2 : vector<8x32xf32>
    %6 = arith.mulf %5, %2 : vector<8x32xf32>
    %cst_1 = arith.constant 4.471500e-02 : f32
    %7 = vector.broadcast %cst_1 : f32 to vector<8x32xf32>
    %8 = arith.mulf %7, %6 : vector<8x32xf32>
    %9 = arith.addf %2, %8 : vector<8x32xf32>
    %cst_2 = arith.constant 0.797884583 : f32
    %10 = vector.broadcast %cst_2 : f32 to vector<8x32xf32>
    %11 = arith.mulf %10, %9 : vector<8x32xf32>
    %12 = math.tanh %11 : vector<8x32xf32>
    %cst_3 = arith.constant 1.000000e+00 : f32
    %13 = vector.broadcast %cst_3 : f32 to vector<8x32xf32>
    %14 = arith.addf %13, %12 : vector<8x32xf32>
    %15 = arith.mulf %4, %14 : vector<8x32xf32>
    %16 = arith.mulf %1, %15 : vector<8x32xf32>
    %c0_4 = arith.constant 0 : index
    %c0_5 = arith.constant 0 : index
    %17 = vector.load %arg2[%c0_4, %c0_5] : memref<8x32xf32, #tpu.memory_space<vmem>>, vector<8x32xf32>
    tpu.vector_store %arg2[%c0_4, %c0_5], %16 {strides = array<i32>} : memref<8x32xf32, #tpu.memory_space<vmem>>, vector<8x32xf32>,
    return
  }
  func.func @transform_0(%arg0: i32) -> (i32, i32) {
    %c0_i32 = arith.constant 0 : i32
    %c0_i32_0 = arith.constant 0 : i32
    return %arg0, %c0_i32 : i32, i32
  }
  func.func @transform_1(%arg0: i32) -> (i32, i32) {
    %c0_i32 = arith.constant 0 : i32
    %c0_i32_0 = arith.constant 0 : i32
    return %arg0, %c0_i32 : i32, i32
  }
}

</mosaic_0001>

<bundles_post_ra>
// kernel: tpu_custom_call.1
= control target key start
LH: loop header
LB: loop body
LE: loop exit
PB: predicated region body
PF: predicated region fallthrough
CT: control target
= control target key end

     0   :  { %6 = vsyncpa [#allocation3], 0  ;;  %s566_s0 = inlined_call_operand.hbm [shape: f32[16,64], index: 0, kind: input, shape index: {}]   ;;  %s567_s1 = inlined_call_operand.hbm [shape: f32[16,32], index: 1, kind: output, shape index: {}]  }
   0x1   :  { %8 = vsyncpa [#allocation3 + $0x1], 0 }
   0x2   :  { %9 = vsyncpa [#allocation4], 0 }
   0x3   :  { %11 = vsyncpa [#allocation4 + $0x1], 0  ;;  %s405_s6 = smov 0   ;;  %s407_s7 = smov 0  }
   0x4   :  { %s409_s8 = smov 0   ;;  %s411_s9 = smov 0  }
   0x5 LB: > { %s426_s10 = sadd.s32 4294967295, %s390_s9   ;;  %s233_s11 = sadd.s32 4294967294, %s390_s9   ;;  %s390_s9 = sphi %s411_s9, %s582_s9   ;;  %s386_s8 = sphi %s409_s8, %s581_s8   ;;  %s382_s7 = sphi %s407_s7, %s580_s7   ;;  %s378_s6 = sphi %s405_s6, %s579_s6  }
   0x6   : > { %s430_s12 = sadd.s32 1, %s390_s9   ;;  %s24_s13 = sadd.s32 1, %s386_s8 }
   0x7   : > { %s21_s14 = ssub.s32 %s390_s9, %s430_s12  ;;  %p31_p0 = scmp.ne.s32.totalorder %s386_s8, %s382_s7 }
   0x8   : > { %p22_p1 = scmp.eq.s32.totalorder %s21_s14, 0  ;;  %p32_p2 = scmp.eq.s32.totalorder %s390_s9, 0 }
   0x9   : > { %p37_p3 = scmp.ne.s32.totalorder %s382_s7, %s378_s6  ;;  %p38_p4 = scmp.eq.s32.totalorder %s426_s10, 0 }
   0xa   : > { %s442_s15 = scalar_select %p22_p1, %s386_s8, %s24_s13  }
   0xb   : > { %p444_p5 = por %p32_p2, %p31_p0  ;;  %p448_p6 = por %p38_p4, %p37_p3 }
   0xc   : > { %p61_p7 = scmp.eq.s32.totalorder %s426_s10, 1  ;;  %p67_p8 = scmp.eq.s32.totalorder %s233_s11, 1 }
   0xd   : > { %p257_p10 = scmp.lt.s32.totalorder %s390_s9, 2  ;;  %s87_s20 = sand.u32 1, %s386_s8  }
   0xe   : > { %p455_p11 = por %p61_p7, %p31_p0  ;;  %p459_p12 = por %p67_p8, %p37_p3 }
   0xf   : > { %s237_s21 = sshll.u32 %s390_s9, 7  ;;  %s236_s22 = sshll.u32 %s87_s20, 3 }
  0x10   : > { %s571_s18 = scalar_select %p455_p11, 1, 0 }
  0x11   : > { %s572_s19 = scalar_select %p459_p12, 1, 0 }
  0x12   : > { %s468_s25 = scalar_lea.hbm %s566_s0, %s237_s21  ;;  %s91_s26 = scalar_lea.vmem [#allocation2], %s236_s22 }
  0x13   : > { %s98_s27 = sshll.u32 %s91_s26, 4  ;;  %p472_p13 = pnand %p257_p10, %p444_p5  ;;  %s476_s27 = int_to_ptr.vmem [resolvable:$true] %s98_s27 }
  0x14   : > { %s88_s29 = scalar_lea.sflag [#allocation3], %s87_s20  ;;  %s294_s30 = scalar_lea.hbm %s468_s25, 128 }
  0x15   : > { %p295_p2 = scmp.ne.s32.totalorder %s468_s25, %s294_s30  ;;  %p296_p3 = pneg %p472_p13 }
  0x16   : > { %s299_s4 = scalar_lea.hbm %s566_s0, 256  ;;  %p300_p5 = scmp.lt.u32.totalorder %s468_s25, %s566_s0 }
  0x17   : > { %p297_p4 = pnand %p296_p3, %p295_p2  ;;  %p301_p8 = scmp.lt.u32.totalorder %s299_s4, %s294_s30 }
  0x18   : > { %p303_p9 = scmp.lt.u32.totalorder %s294_s30, %s468_s25 }
  0x19   : > { %p298_p7 = pneg %p297_p4  ;;  %p302_p10 = por %p301_p8, %p300_p5 }
  0x1b   : > { %p304_p0 = por %p303_p9, %p302_p10 }
  0x1d   : > { %p305_p1 = pnand %p304_p0, %p298_p7 }
  0x1f   : > { %308 = shalt.err (!%p305_p1)
}
  0x20   : > { %s309_s13 = scalar_lea.vmem %s476_s27, 128  ;;  %s392_s14 = smov [#allocation2]  }
  0x21   : > { %p310_p2 = scmp.ne.s32.totalorder %s476_s27, %s309_s13  ;;  %s314_s16 = sshll.u32 %s392_s14, 4  ;;  %s315_s16 = int_to_ptr.vmem [resolvable:$false] %s314_s16 }
  0x22   : > { %s316_s20 = scalar_lea.vmem %s315_s16, 256  ;;  %p317_p11 = scmp.lt.s32.totalorder %s476_s27, %s315_s16 }
  0x23   : > { %p312_p4 = pnand %p310_p2, %p296_p3  ;;  %p318_p5 = scmp.lt.s32.totalorder %s316_s20, %s309_s13 }
  0x25   : > { %p313_p12 = pneg %p312_p4  ;;  %p319_p8 = por %p318_p5, %p317_p11 }
  0x27   : > { %p320_p9 = pnand %p319_p8, %p313_p12 }
  0x29   : > { %323 = shalt.err (!%p320_p9)
}
  0x2a   : > { %252 = dma.hbm_to_vmem [thread:$0]  (!%p472_p13), %s468_s25, 128, %s476_s27, %s88_s29  }
  0x2b   : > { %p574_p0 = scmp.lt.s32.totalorder %s390_s9, 3  ;;  %p575_p1 = scmp.ge.s32.totalorder %s390_s9, 1 }
  0x2d   : > { %p104_p3 = pnand %p575_p1, %p574_p0 }
  0x2e   : > { %s510_s21 = sand.u32 (!%p104_p3), 1, %s382_s7  }
  0x2f   : > { %107 = sbr.rel (%p104_p3) target bundleno = 212 (0xd4), region = 24  ;;  %s239_s22 = sshll.u32 (!%p104_p3), %s510_s21, 3 }
  0x30   : > { %s110_s23 = scalar_lea.sflag (!%p104_p3), [#allocation3], %s510_s21  ;;  %s113_s24 = scalar_lea.vmem (!%p104_p3), [#allocation2], %s239_s22 }
  0x36   : > { %369 = dma.done.wait (%p448_p6), %s110_s23, 128  }
  0x37   : > { %371 = vsyncadd (%p448_p6), %s110_s23, 4294967168  ;;  %v132_v0 = vld [vmem:[%s113_s24] sm:$0xff]  ;;  %s393_s25 = smov 96   ;;  %s242_s26 = sshll.u32 %s426_s10, 7  ;;  %vm147_vm0 = vcmask 261120  }
  0x38   : > { %v134_v1 = vmul.f32 %v132_v0, %v132_v0  ;;  %v133_v6 = vmul.f32 0.5, %v132_v0  ;;  %s131_s27 = scalar_lea.vmem [#allocation5], %s239_s22  ;;  %s522_s30 = scalar_lea.hbm %s567_s1, %s242_s26 }
  0x39   : > { %s163_s17 = sshll.u32 %s131_s27, 4  ;;  %s150_s2 = scalar_lea.sflag [#allocation4], %s510_s21  ;;  %s524_s17 = int_to_ptr.vmem [resolvable:$true] %s163_s17 }
  0x3a   : > { %v135_v2 = vmul.f32 %v134_v1, %v132_v0  ;;  %s324_s3 = scalar_lea.vmem %s524_s17, 128  ;;  %p576_p11 = scmp.ne.s32.totalorder %s571_s18, 0 }
  0x3b   : > { %p325_p6 = scmp.ne.s32.totalorder %s524_s17, %s324_s3  ;;  %s394_s10 = smov [#allocation5]  }
  0x3c   : > { %v136_v3 = vmul.f32 0.044715, %v135_v2  ;;  %s328_s4 = sshll.u32 %s394_s10, 4  ;;  %s329_s4 = int_to_ptr.vmem [resolvable:$false] %s328_s4 }
  0x3d   : > { %p326_p12 = pnand %p325_p6, %p576_p11  ;;  %s330_s5 = scalar_lea.vmem %s329_s4, 256 }
  0x3e   : > { %v137_v4 = vadd.f32 %v136_v3, %v132_v0  ;;  %p331_p7 = scmp.lt.s32.totalorder %s524_s17, %s329_s4  ;;  %p332_p10 = scmp.lt.s32.totalorder %s330_s5, %s324_s3 }
  0x3f   : > { %p327_p13 = pneg %p326_p12 }
  0x40   : > { %v138_v5 = vmul.f32 0.7978846, %v137_v4  ;;  %p333_p2 = por %p332_p10, %p331_p7 }
  0x42   : > { %292 = vtanh.f32 %v138_v5  ;;  %p334_p4 = pnand %p333_p2, %p327_p13 }
  0x4c   : > { %v293_v7 = vpop.eup %292 }
  0x4d   : > { %v140_v8 = vadd.f32 1.0, %v293_v7 }
  0x4f   : > { %v141_v9 = vmul.f32 %v140_v8, %v133_v6 }
  0x51   : > { %143 = vrot.lane.b32.xlu0 %v141_v9, %s393_s25 }
  0xc3   : > { %v144_v10 = vpop.permute.xlu0 %143 }
  0xc4   : > { %v146_v11 = vmul.f32 %v144_v10, %v132_v0 }
  0xc6   : > { %148 = vst.msk [vmem:[%s131_s27] sm:$0xff] %vm147_vm0, %v146_v11 }
  0xc7   : > { %337 = shalt.err (!%p334_p4)
}
  0xc8   : > { %s338_s11 = scalar_lea.hbm %s522_s30, 128  ;;  %s342_s16 = scalar_lea.hbm %s567_s1, 256 }
  0xc9   : > { %p339_p5 = scmp.ne.s32.totalorder %s522_s30, %s338_s11  ;;  %p343_p0 = scmp.lt.u32.totalorder %s522_s30, %s567_s1 }
  0xca   : > { %p344_p1 = scmp.lt.u32.totalorder %s342_s16, %s338_s11  ;;  %p346_p6 = scmp.lt.u32.totalorder %s338_s11, %s522_s30 }
  0xcb   : > { %p340_p8 = pnand %p339_p5, %p576_p11 }
  0xcc   : > { %p345_p3 = por %p344_p1, %p343_p0 }
  0xcd   : > { %p341_p9 = pneg %p340_p8 }
  0xce   : > { %p347_p12 = por %p346_p6, %p345_p3 }
  0xd0   : > { %p348_p13 = pnand %p347_p12, %p341_p9 }
  0xd2   : > { %351 = shalt.err (!%p348_p13)
}
  0xd3   : > { %247 = dma.vmem_to_hbm [thread:$0]  (%p576_p11), %s524_s17, 128, %s522_s30, %s150_s2  }
  0xd4 PF: > { %s175_s22 = sand.u32 1, %s378_s6   ;;  %p577_p7 = scmp.ne.s32.totalorder %s572_s19, 0 }
  0xd5   : > { %p578_p10 = scmp.ge.s32.totalorder %s390_s9, 2  ;;  %s176_s23 = scalar_lea.sflag [#allocation4], %s175_s22 }
  0xd7   : > { %p254_p2 = pnand %p578_p10, %p577_p7 }
  0xd9   : > { %373 = dma.done.wait (!%p254_p2), %s176_s23, 128  }
  0xda   : > { %375 = vsyncadd (!%p254_p2), %s176_s23, 4294967168  ;;  %p14_p4 = scmp.ge.s32.totalorder %s430_s12, 4   ;;  %s579_s6 = smov %s382_s7 }
  0xdb   : > { %s580_s7 = smov %s386_s8  ;;  %s581_s8 = smov %s442_s15 }
  0xdc   : > { %s582_s9 = smov %s430_s12  ;;  %16 = sbr.rel (!%p14_p4) target bundleno = 5 (0x5), region = 69 }
  0xe3   :  { %181 = vsyncpa [#allocation3], 1 }
  0xe4   :  { %183 = vsyncpa [#allocation3 + $0x1], 1 }
  0xe5   :  { %184 = vsyncpa [#allocation4], 1 }
  0xe6   :  { %186 = vsyncpa [#allocation4 + $0x1], 1 }

</bundles_post_ra>
